<compile_context>
chip_gen: v7x
topology: tpu7x:2x2x1
jax: 0.10.0
libtpu: 0.0.40
codegen_flags: <defaults>
</compile_context>

<pallas_src>
import functools
import math

import jax
import jax.numpy as jnp
from jax.experimental import pallas as pl
from jax.experimental.pallas import tpu as pltpu


def _mha_kernel(norm_factor, B, H, Nq, G, hd,
                qf_ref, hf_ref, wq_ref, wkv_ref, wout_ref, o_ref, heads_ref):
    """Single-invocation MHA.

    qf_ref:   (B*Nq, D)        flattened queries
    hf_ref:   (B*G,  D)        flattened keys/values input
    wq_ref:   (D, H*hd)        Q projection, heads folded into lanes
    wkv_ref:  (D, 2*H*hd)      K|V projections, heads folded into lanes, K and V fused
    wout_ref: (H*hd, D)        output projection (== torch Wout.view(-1, D))
    o_ref:    (B*Nq, D)        output
    heads_ref:(B*Nq, H*hd)     VMEM scratch holding concatenated per-head outputs
    """
    HH = H * hd

    # Folded projections: one MXU matmul for Q, one for K|V.
    Q = jnp.dot(qf_ref[...], wq_ref[...],
                preferred_element_type=jnp.float32) * norm_factor      # (B*Nq, H*hd)
    KV = jnp.dot(hf_ref[...], wkv_ref[...],
                 preferred_element_type=jnp.float32)                   # (B*G, 2*H*hd)

    # Per-(batch, head) scaled dot-product attention on tiny static slices.
    for b in range(B):
        q_b = Q[b * Nq:(b + 1) * Nq, :]                                # (Nq, H*hd)
        kv_b = KV[b * G:(b + 1) * G, :]                                # (G, 2*H*hd)
        for h in range(H):
            q_bh = q_b[:, h * hd:(h + 1) * hd]                         # (Nq, hd)
            k_bh = kv_b[:, h * hd:(h + 1) * hd]                        # (G, hd)
            v_bh = kv_b[:, HH + h * hd:HH + (h + 1) * hd]              # (G, hd)

            # logits = (norm * q) @ k^T, contracting hd directly (no explicit .T).
            logits = jnp.einsum('ne,ge->ng', q_bh, k_bh,
                                preferred_element_type=jnp.float32)    # (Nq, G)
            m = jnp.max(logits, axis=-1, keepdims=True)
            e = jnp.exp(logits - m)
            attn = e * (1.0 / jnp.sum(e, axis=-1, keepdims=True))

            head = jnp.dot(attn, v_bh,
                           preferred_element_type=jnp.float32)         # (Nq, hd)
            # Assemble into the (B*Nq, H*hd) scratch (static, aligned slice store).
            heads_ref[b * Nq:(b + 1) * Nq, h * hd:(h + 1) * hd] = head

    # Fused out-projection + head reduction: single (B*Nq, H*hd)@(H*hd, D) matmul;
    # the sum over heads rides inside the K = H*hd contraction on the MXU.
    o_ref[...] = jnp.dot(heads_ref[...], wout_ref[...],
                         preferred_element_type=jnp.float32).astype(o_ref.dtype)


def multi_head_attention(q, h, Wq, Wk, Wv, Wout):
    """q: (B, Nq, D); h: (B, G, D) or None (defaults to q);
    Wq/Wk/Wv: (H, D, hd); Wout: (H, hd, D). Returns (B, Nq, D)."""
    if h is None:
        h = q
    B, Nq, D = q.shape
    _, G, _ = h.shape
    H, _, hd = Wq.shape
    HH = H * hd
    norm_factor = 1.0 / math.sqrt(hd)

    # Wrapper-side layout plumbing (one-time XLA ops, not in-kernel compute):
    qf = q.reshape(B * Nq, D)                                   # (B*Nq, D)
    hf = h.reshape(B * G, D)                                    # (B*G,  D)
    wq2 = jnp.transpose(Wq, (1, 0, 2)).reshape(D, HH)           # (D, H*hd)
    wk2 = jnp.transpose(Wk, (1, 0, 2)).reshape(D, HH)
    wv2 = jnp.transpose(Wv, (1, 0, 2)).reshape(D, HH)
    wkv2 = jnp.concatenate([wk2, wv2], axis=1)                  # (D, 2*H*hd), K|V fused
    wout2 = Wout.reshape(HH, D)                                 # == torch Wout.view(-1, D)

    kernel = functools.partial(_mha_kernel, norm_factor, B, H, Nq, G, hd)

    out_flat = pl.pallas_call(
        kernel,
        out_shape=jax.ShapeDtypeStruct((B * Nq, D), q.dtype),
        # Single kernel invocation: every operand lives fully in VMEM, DMA'd once.
        in_specs=[
            pl.BlockSpec(memory_space=pltpu.MemorySpace.VMEM),  # qf
            pl.BlockSpec(memory_space=pltpu.MemorySpace.VMEM),  # hf
            pl.BlockSpec(memory_space=pltpu.MemorySpace.VMEM),  # wq2
            pl.BlockSpec(memory_space=pltpu.MemorySpace.VMEM),  # wkv2
            pl.BlockSpec(memory_space=pltpu.MemorySpace.VMEM),  # wout2
        ],
        out_specs=pl.BlockSpec(memory_space=pltpu.MemorySpace.VMEM),
        scratch_shapes=[pltpu.VMEM((B * Nq, HH), jnp.float32)],  # head-concat buffer
    )(qf, hf, wq2, wkv2, wout2)

    return out_flat.reshape(B, Nq, D)


def _reference(q, h, Wq, Wk, Wv, Wout):
    """Pure-JAX reference mirroring the PyTorch forward (mask=None)."""
    H, D, hd = Wq.shape
    norm = 1.0 / math.sqrt(hd)
    Q = jnp.einsum('bnd,hde->hbne', q, Wq)
    K = jnp.einsum('bgd,hde->hbge', h, Wk)
    V = jnp.einsum('bgd,hde->hbge', h, Wv)
    compat = norm * jnp.einsum('hbne,hbge->hbng', Q, K)
    attn = jax.nn.softmax(compat, axis=-1)
    heads = jnp.einsum('hbng,hbge->hbne', attn, V)
    out = jnp.einsum('hbne,hed->bnd', heads, Wout)
    return out


if __name__ == "__main__":
    embed_dim = 32
    num_heads = 4
    hdim = embed_dim // num_heads
    B, Nq, G = 2, 8, 8

    key = jax.random.PRNGKey(0)
    kq, kh, k1, k2, k3, k4 = jax.random.split(key, 6)

    q = jax.random.normal(kq, (B, Nq, embed_dim), dtype=jnp.float32)
    h = jax.random.normal(kh, (B, G, embed_dim), dtype=jnp.float32)

    # Deterministic param init matching nn.Module: U(-stdv, stdv), stdv = 1/sqrt(size(-1))
    stdv_qkv = 1.0 / math.sqrt(hdim)
    stdv_out = 1.0 / math.sqrt(embed_dim)
    Wq = jax.random.uniform(k1, (num_heads, embed_dim, hdim), jnp.float32,
                            minval=-stdv_qkv, maxval=stdv_qkv)
    Wk = jax.random.uniform(k2, (num_heads, embed_dim, hdim), jnp.float32,
                            minval=-stdv_qkv, maxval=stdv_qkv)
    Wv = jax.random.uniform(k3, (num_heads, embed_dim, hdim), jnp.float32,
                            minval=-stdv_qkv, maxval=stdv_qkv)
    Wout = jax.random.uniform(k4, (num_heads, hdim, embed_dim), jnp.float32,
                              minval=-stdv_out, maxval=stdv_out)

    out = multi_head_attention(q, h, Wq, Wk, Wv, Wout)
    out = jax.block_until_ready(out)

    ref = _reference(q, h, Wq, Wk, Wv, Wout)
    assert out.shape == (B, Nq, embed_dim)
    assert jnp.allclose(out, ref, atol=1e-5, rtol=1e-5), "mismatch vs reference"

    print("KERNEL_OK")
</pallas_src>

<mosaic_0001>
module attributes {stable_mosaic.version = 11 : i64} {
  func.func @_mha_kernel(%arg0: memref<16x32xf32, #tpu.memory_space<vmem>>, %arg1: memref<16x32xf32, #tpu.memory_space<vmem>>, %arg2: memref<32x32xf32, #tpu.memory_space<vmem>>, %arg3: memref<32x64xf32, #tpu.memory_space<vmem>>, %arg4: memref<32x32xf32, #tpu.memory_space<vmem>>, %arg5: memref<16x32xf32, #tpu.memory_space<vmem>>, %arg6: memref<16x32xf32, #tpu.memory_space<vmem>>) attributes {dimension_semantics = [], scalar_prefetch = 0 : i64, scratch_operands = 1 : i64, tpu.core_type = #tpu.core_type<tc>} {
    %c0 = arith.constant 0 : index
    %c0_0 = arith.constant 0 : index
    %0 = vector.load %arg0[%c0, %c0_0] : memref<16x32xf32, #tpu.memory_space<vmem>>, vector<16x32xf32>
    %c0_1 = arith.constant 0 : index
    %c0_2 = arith.constant 0 : index
    %1 = vector.load %arg2[%c0_1, %c0_2] : memref<32x32xf32, #tpu.memory_space<vmem>>, vector<32x32xf32>
    %cst = arith.constant dense<0.000000e+00> : vector<16x32xf32>
    %2 = tpu.matmul %0, %1, %cst {dimension_numbers = #tpu.dot_dimension_numbers<[1], [0], [0], [1], [0, 0, 1, 1], [], []>} : vector<16x32xf32>, vector<32x32xf32>, vector<16x32xf32> -> vector<16x32xf32>
    %cst_3 = arith.constant 0.353553385 : f32
    %3 = vector.broadcast %cst_3 : f32 to vector<16x32xf32>
    %4 = arith.mulf %2, %3 : vector<16x32xf32>
    %c0_4 = arith.constant 0 : index
    %c0_5 = arith.constant 0 : index
    %5 = vector.load %arg1[%c0_4, %c0_5] : memref<16x32xf32, #tpu.memory_space<vmem>>, vector<16x32xf32>
    %c0_6 = arith.constant 0 : index
    %c0_7 = arith.constant 0 : index
    %6 = vector.load %arg3[%c0_6, %c0_7] : memref<32x64xf32, #tpu.memory_space<vmem>>, vector<32x64xf32>
    %cst_8 = arith.constant dense<0.000000e+00> : vector<16x64xf32>
    %7 = tpu.matmul %5, %6, %cst_8 {dimension_numbers = #tpu.dot_dimension_numbers<[1], [0], [0], [1], [0, 0, 1, 1], [], []>} : vector<16x32xf32>, vector<32x64xf32>, vector<16x64xf32> -> vector<16x64xf32>
    %8 = vector.extract_strided_slice %4 {offsets = [0, 0], sizes = [8, 32], strides = [1, 1]} : vector<16x32xf32> to vector<8x32xf32>
    %9 = vector.extract_strided_slice %7 {offsets = [0, 0], sizes = [8, 64], strides = [1, 1]} : vector<16x64xf32> to vector<8x64xf32>
    %10 = vector.extract_strided_slice %8 {offsets = [0, 0], sizes = [8, 8], strides = [1, 1]} : vector<8x32xf32> to vector<8x8xf32>
    %11 = vector.extract_strided_slice %9 {offsets = [0, 0], sizes = [8, 8], strides = [1, 1]} : vector<8x64xf32> to vector<8x8xf32>
    %12 = vector.extract_strided_slice %9 {offsets = [0, 32], sizes = [8, 8], strides = [1, 1]} : vector<8x64xf32> to vector<8x8xf32>
    "tpu.trace_start"() <{level = 10 : i32, message = "ne,ge->ng"}> : () -> ()
    %cst_9 = arith.constant dense<0.000000e+00> : vector<8x8xf32>
    %13 = tpu.matmul %10, %11, %cst_9 {dimension_numbers = #tpu.dot_dimension_numbers<[1], [1], [0], [0], [0, 0, 1, 0], [], []>} : vector<8x8xf32>, vector<8x8xf32>, vector<8x8xf32> -> vector<8x8xf32>
    "tpu.trace_stop"() : () -> ()
    %cst_10 = arith.constant dense<0xFF800000> : vector<8xf32>
    %14 = vector.multi_reduction <maximumf>, %13, %cst_10 [1] : vector<8x8xf32> to vector<8xf32>
    %15 = vector.shape_cast %14 : vector<8xf32> to vector<8x1xf32>
    %16 = vector.broadcast %15 : vector<8x1xf32> to vector<8x8xf32>
    %17 = arith.subf %13, %16 : vector<8x8xf32>
    %18 = math.exp %17 : vector<8x8xf32>
    %cst_11 = arith.constant dense<0.000000e+00> : vector<8xf32>
    %19 = vector.multi_reduction <add>, %18, %cst_11 [1] : vector<8x8xf32> to vector<8xf32>
    %20 = vector.shape_cast %19 : vector<8xf32> to vector<8x1xf32>
    %cst_12 = arith.constant 1.000000e+00 : f32
    %21 = vector.broadcast %cst_12 : f32 to vector<8x1xf32>
    %22 = arith.divf %21, %20 : vector<8x1xf32>
    %23 = vector.broadcast %22 : vector<8x1xf32> to vector<8x8xf32>
    %24 = arith.mulf %18, %23 : vector<8x8xf32>
    %cst_13 = arith.constant dense<0.000000e+00> : vector<8x8xf32>
    %25 = tpu.matmul %24, %12, %cst_13 {dimension_numbers = #tpu.dot_dimension_numbers<[1], [0], [0], [1], [0, 0, 1, 1], [], []>} : vector<8x8xf32>, vector<8x8xf32>, vector<8x8xf32> -> vector<8x8xf32>
    %c0_14 = arith.constant 0 : index
    %c0_15 = arith.constant 0 : index
    %26 = vector.load %arg6[%c0_14, %c0_15] : memref<16x32xf32, #tpu.memory_space<vmem>>, vector<8x8xf32>
    tpu.vector_store %arg6[%c0_14, %c0_15], %25 {strides = array<i32>} : memref<16x32xf32, #tpu.memory_space<vmem>>, vector<8x8xf32>,
    %27 = vector.extract_strided_slice %8 {offsets = [0, 8], sizes = [8, 8], strides = [1, 1]} : vector<8x32xf32> to vector<8x8xf32>
    %28 = vector.extract_strided_slice %9 {offsets = [0, 8], sizes = [8, 8], strides = [1, 1]} : vector<8x64xf32> to vector<8x8xf32>
    %29 = vector.extract_strided_slice %9 {offsets = [0, 40], sizes = [8, 8], strides = [1, 1]} : vector<8x64xf32> to vector<8x8xf32>
    "tpu.trace_start"() <{level = 10 : i32, message = "ne,ge->ng"}> : () -> ()
    %cst_16 = arith.constant dense<0.000000e+00> : vector<8x8xf32>
    %30 = tpu.matmul %27, %28, %cst_16 {dimension_numbers = #tpu.dot_dimension_numbers<[1], [1], [0], [0], [0, 0, 1, 0], [], []>} : vector<8x8xf32>, vector<8x8xf32>, vector<8x8xf32> -> vector<8x8xf32>
    "tpu.trace_stop"() : () -> ()
    %cst_17 = arith.constant dense<0xFF800000> : vector<8xf32>
    %31 = vector.multi_reduction <maximumf>, %30, %cst_17 [1] : vector<8x8xf32> to vector<8xf32>
    %32 = vector.shape_cast %31 : vector<8xf32> to vector<8x1xf32>
    %33 = vector.broadcast %32 : vector<8x1xf32> to vector<8x8xf32>
    %34 = arith.subf %30, %33 : vector<8x8xf32>
    %35 = math.exp %34 : vector<8x8xf32>
    %cst_18 = arith.constant dense<0.000000e+00> : vector<8xf32>
    %36 = vector.multi_reduction <add>, %35, %cst_18 [1] : vector<8x8xf32> to vector<8xf32>
    %37 = vector.shape_cast %36 : vector<8xf32> to vector<8x1xf32>
    %cst_19 = arith.constant 1.000000e+00 : f32
    %38 = vector.broadcast %cst_19 : f32 to vector<8x1xf32>
    %39 = arith.divf %38, %37 : vector<8x1xf32>
    %40 = vector.broadcast %39 : vector<8x1xf32> to vector<8x8xf32>
    %41 = arith.mulf %35, %40 : vector<8x8xf32>
    %cst_20 = arith.constant dense<0.000000e+00> : vector<8x8xf32>
    %42 = tpu.matmul %41, %29, %cst_20 {dimension_numbers = #tpu.dot_dimension_numbers<[1], [0], [0], [1], [0, 0, 1, 1], [], []>} : vector<8x8xf32>, vector<8x8xf32>, vector<8x8xf32> -> vector<8x8xf32>
    %c0_21 = arith.constant 0 : index
    %c8 = arith.constant 8 : index
    %43 = vector.load %arg6[%c0_21, %c8] : memref<16x32xf32, #tpu.memory_space<vmem>>, vector<8x8xf32>
    tpu.vector_store %arg6[%c0_21, %c8], %42 {strides = array<i32>} : memref<16x32xf32, #tpu.memory_space<vmem>>, vector<8x8xf32>,
    %44 = vector.extract_strided_slice %8 {offsets = [0, 16], sizes = [8, 8], strides = [1, 1]} : vector<8x32xf32> to vector<8x8xf32>
    %45 = vector.extract_strided_slice %9 {offsets = [0, 16], sizes = [8, 8], strides = [1, 1]} : vector<8x64xf32> to vector<8x8xf32>
    %46 = vector.extract_strided_slice %9 {offsets = [0, 48], sizes = [8, 8], strides = [1, 1]} : vector<8x64xf32> to vector<8x8xf32>
    "tpu.trace_start"() <{level = 10 : i32, message = "ne,ge->ng"}> : () -> ()
    %cst_22 = arith.constant dense<0.000000e+00> : vector<8x8xf32>
    %47 = tpu.matmul %44, %45, %cst_22 {dimension_numbers = #tpu.dot_dimension_numbers<[1], [1], [0], [0], [0, 0, 1, 0], [], []>} : vector<8x8xf32>, vector<8x8xf32>, vector<8x8xf32> -> vector<8x8xf32>
    "tpu.trace_stop"() : () -> ()
    %cst_23 = arith.constant dense<0xFF800000> : vector<8xf32>
    %48 = vector.multi_reduction <maximumf>, %47, %cst_23 [1] : vector<8x8xf32> to vector<8xf32>
    %49 = vector.shape_cast %48 : vector<8xf32> to vector<8x1xf32>
    %50 = vector.broadcast %49 : vector<8x1xf32> to vector<8x8xf32>
    %51 = arith.subf %47, %50 : vector<8x8xf32>
    %52 = math.exp %51 : vector<8x8xf32>
    %cst_24 = arith.constant dense<0.000000e+00> : vector<8xf32>
    %53 = vector.multi_reduction <add>, %52, %cst_24 [1] : vector<8x8xf32> to vector<8xf32>
    %54 = vector.shape_cast %53 : vector<8xf32> to vector<8x1xf32>
    %cst_25 = arith.constant 1.000000e+00 : f32
    %55 = vector.broadcast %cst_25 : f32 to vector<8x1xf32>
    %56 = arith.divf %55, %54 : vector<8x1xf32>
    %57 = vector.broadcast %56 : vector<8x1xf32> to vector<8x8xf32>
    %58 = arith.mulf %52, %57 : vector<8x8xf32>
    %cst_26 = arith.constant dense<0.000000e+00> : vector<8x8xf32>
    %59 = tpu.matmul %58, %46, %cst_26 {dimension_numbers = #tpu.dot_dimension_numbers<[1], [0], [0], [1], [0, 0, 1, 1], [], []>} : vector<8x8xf32>, vector<8x8xf32>, vector<8x8xf32> -> vector<8x8xf32>
    %c0_27 = arith.constant 0 : index
    %c16 = arith.constant 16 : index
    %60 = vector.load %arg6[%c0_27, %c16] : memref<16x32xf32, #tpu.memory_space<vmem>>, vector<8x8xf32>
    tpu.vector_store %arg6[%c0_27, %c16], %59 {strides = array<i32>} : memref<16x32xf32, #tpu.memory_space<vmem>>, vector<8x8xf32>,
    %61 = vector.extract_strided_slice %8 {offsets = [0, 24], sizes = [8, 8], strides = [1, 1]} : vector<8x32xf32> to vector<8x8xf32>
    %62 = vector.extract_strided_slice %9 {offsets = [0, 24], sizes = [8, 8], strides = [1, 1]} : vector<8x64xf32> to vector<8x8xf32>
    %63 = vector.extract_strided_slice %9 {offsets = [0, 56], sizes = [8, 8], strides = [1, 1]} : vector<8x64xf32> to vector<8x8xf32>
    "tpu.trace_start"() <{level = 10 : i32, message = "ne,ge->ng"}> : () -> ()
    %cst_28 = arith.constant dense<0.000000e+00> : vector<8x8xf32>
    %64 = tpu.matmul %61, %62, %cst_28 {dimension_numbers = #tpu.dot_dimension_numbers<[1], [1], [0], [0], [0, 0, 1, 0], [], []>} : vector<8x8xf32>, vector<8x8xf32>, vector<8x8xf32> -> vector<8x8xf32>
    "tpu.trace_stop"() : () -> ()
    %cst_29 = arith.constant dense<0xFF800000> : vector<8xf32>
    %65 = vector.multi_reduction <maximumf>, %64, %cst_29 [1] : vector<8x8xf32> to vector<8xf32>
    %66 = vector.shape_cast %65 : vector<8xf32> to vector<8x1xf32>
    %67 = vector.broadcast %66 : vector<8x1xf32> to vector<8x8xf32>
    %68 = arith.subf %64, %67 : vector<8x8xf32>
    %69 = math.exp %68 : vector<8x8xf32>
    %cst_30 = arith.constant dense<0.000000e+00> : vector<8xf32>
    %70 = vector.multi_reduction <add>, %69, %cst_30 [1] : vector<8x8xf32> to vector<8xf32>
    %71 = vector.shape_cast %70 : vector<8xf32> to vector<8x1xf32>
    %cst_31 = arith.constant 1.000000e+00 : f32
    %72 = vector.broadcast %cst_31 : f32 to vector<8x1xf32>
    %73 = arith.divf %72, %71 : vector<8x1xf32>
    %74 = vector.broadcast %73 : vector<8x1xf32> to vector<8x8xf32>
    %75 = arith.mulf %69, %74 : vector<8x8xf32>
    %cst_32 = arith.constant dense<0.000000e+00> : vector<8x8xf32>
    %76 = tpu.matmul %75, %63, %cst_32 {dimension_numbers = #tpu.dot_dimension_numbers<[1], [0], [0], [1], [0, 0, 1, 1], [], []>} : vector<8x8xf32>, vector<8x8xf32>, vector<8x8xf32> -> vector<8x8xf32>
    %c0_33 = arith.constant 0 : index
    %c24 = arith.constant 24 : index
    %77 = vector.load %arg6[%c0_33, %c24] : memref<16x32xf32, #tpu.memory_space<vmem>>, vector<8x8xf32>
    tpu.vector_store %arg6[%c0_33, %c24], %76 {strides = array<i32>} : memref<16x32xf32, #tpu.memory_space<vmem>>, vector<8x8xf32>,
    %78 = vector.extract_strided_slice %4 {offsets = [8, 0], sizes = [8, 32], strides = [1, 1]} : vector<16x32xf32> to vector<8x32xf32>
    %79 = vector.extract_strided_slice %7 {offsets = [8, 0], sizes = [8, 64], strides = [1, 1]} : vector<16x64xf32> to vector<8x64xf32>
    %80 = vector.extract_strided_slice %78 {offsets = [0, 0], sizes = [8, 8], strides = [1, 1]} : vector<8x32xf32> to vector<8x8xf32>
    %81 = vector.extract_strided_slice %79 {offsets = [0, 0], sizes = [8, 8], strides = [1, 1]} : vector<8x64xf32> to vector<8x8xf32>
    %82 = vector.extract_strided_slice %79 {offsets = [0, 32], sizes = [8, 8], strides = [1, 1]} : vector<8x64xf32> to vector<8x8xf32>
    "tpu.trace_start"() <{level = 10 : i32, message = "ne,ge->ng"}> : () -> ()
    %cst_34 = arith.constant dense<0.000000e+00> : vector<8x8xf32>
    %83 = tpu.matmul %80, %81, %cst_34 {dimension_numbers = #tpu.dot_dimension_numbers<[1], [1], [0], [0], [0, 0, 1, 0], [], []>} : vector<8x8xf32>, vector<8x8xf32>, vector<8x8xf32> -> vector<8x8xf32>
    "tpu.trace_stop"() : () -> ()
    %cst_35 = arith.constant dense<0xFF800000> : vector<8xf32>
    %84 = vector.multi_reduction <maximumf>, %83, %cst_35 [1] : vector<8x8xf32> to vector<8xf32>
    %85 = vector.shape_cast %84 : vector<8xf32> to vector<8x1xf32>
    %86 = vector.broadcast %85 : vector<8x1xf32> to vector<8x8xf32>
    %87 = arith.subf %83, %86 : vector<8x8xf32>
    %88 = math.exp %87 : vector<8x8xf32>
    %cst_36 = arith.constant dense<0.000000e+00> : vector<8xf32>
    %89 = vector.multi_reduction <add>, %88, %cst_36 [1] : vector<8x8xf32> to vector<8xf32>
    %90 = vector.shape_cast %89 : vector<8xf32> to vector<8x1xf32>
    %cst_37 = arith.constant 1.000000e+00 : f32
    %91 = vector.broadcast %cst_37 : f32 to vector<8x1xf32>
    %92 = arith.divf %91, %90 : vector<8x1xf32>
    %93 = vector.broadcast %92 : vector<8x1xf32> to vector<8x8xf32>
    %94 = arith.mulf %88, %93 : vector<8x8xf32>
    %cst_38 = arith.constant dense<0.000000e+00> : vector<8x8xf32>
    %95 = tpu.matmul %94, %82, %cst_38 {dimension_numbers = #tpu.dot_dimension_numbers<[1], [0], [0], [1], [0, 0, 1, 1], [], []>} : vector<8x8xf32>, vector<8x8xf32>, vector<8x8xf32> -> vector<8x8xf32>
    %c8_39 = arith.constant 8 : index
    %c0_40 = arith.constant 0 : index
    %96 = vector.load %arg6[%c8_39, %c0_40] : memref<16x32xf32, #tpu.memory_space<vmem>>, vector<8x8xf32>
    tpu.vector_store %arg6[%c8_39, %c0_40], %95 {strides = array<i32>} : memref<16x32xf32, #tpu.memory_space<vmem>>, vector<8x8xf32>,
    %97 = vector.extract_strided_slice %78 {offsets = [0, 8], sizes = [8, 8], strides = [1, 1]} : vector<8x32xf32> to vector<8x8xf32>
    %98 = vector.extract_strided_slice %79 {offsets = [0, 8], sizes = [8, 8], strides = [1, 1]} : vector<8x64xf32> to vector<8x8xf32>
    %99 = vector.extract_strided_slice %79 {offsets = [0, 40], sizes = [8, 8], strides = [1, 1]} : vector<8x64xf32> to vector<8x8xf32>
    "tpu.trace_start"() <{level = 10 : i32, message = "ne,ge->ng"}> : () -> ()
    %cst_41 = arith.constant dense<0.000000e+00> : vector<8x8xf32>
    %100 = tpu.matmul %97, %98, %cst_41 {dimension_numbers = #tpu.dot_dimension_numbers<[1], [1], [0], [0], [0, 0, 1, 0], [], []>} : vector<8x8xf32>, vector<8x8xf32>, vector<8x8xf32> -> vector<8x8xf32>
    "tpu.trace_stop"() : () -> ()
    %cst_42 = arith.constant dense<0xFF800000> : vector<8xf32>
    %101 = vector.multi_reduction <maximumf>, %100, %cst_42 [1] : vector<8x8xf32> to vector<8xf32>
    %102 = vector.shape_cast %101 : vector<8xf32> to vector<8x1xf32>
    %103 = vector.broadcast %102 : vector<8x1xf32> to vector<8x8xf32>
    %104 = arith.subf %100, %103 : vector<8x8xf32>
    %105 = math.exp %104 : vector<8x8xf32>
    %cst_43 = arith.constant dense<0.000000e+00> : vector<8xf32>
    %106 = vector.multi_reduction <add>, %105, %cst_43 [1] : vector<8x8xf32> to vector<8xf32>
    %107 = vector.shape_cast %106 : vector<8xf32> to vector<8x1xf32>
    %cst_44 = arith.constant 1.000000e+00 : f32
    %108 = vector.broadcast %cst_44 : f32 to vector<8x1xf32>
    %109 = arith.divf %108, %107 : vector<8x1xf32>
    %110 = vector.broadcast %109 : vector<8x1xf32> to vector<8x8xf32>
    %111 = arith.mulf %105, %110 : vector<8x8xf32>
    %cst_45 = arith.constant dense<0.000000e+00> : vector<8x8xf32>
    %112 = tpu.matmul %111, %99, %cst_45 {dimension_numbers = #tpu.dot_dimension_numbers<[1], [0], [0], [1], [0, 0, 1, 1], [], []>} : vector<8x8xf32>, vector<8x8xf32>, vector<8x8xf32> -> vector<8x8xf32>
    %c8_46 = arith.constant 8 : index
    %c8_47 = arith.constant 8 : index
    %113 = vector.load %arg6[%c8_46, %c8_47] : memref<16x32xf32, #tpu.memory_space<vmem>>, vector<8x8xf32>
    tpu.vector_store %arg6[%c8_46, %c8_47], %112 {strides = array<i32>} : memref<16x32xf32, #tpu.memory_space<vmem>>, vector<8x8xf32>,
    %114 = vector.extract_strided_slice %78 {offsets = [0, 16], sizes = [8, 8], strides = [1, 1]} : vector<8x32xf32> to vector<8x8xf32>
    %115 = vector.extract_strided_slice %79 {offsets = [0, 16], sizes = [8, 8], strides = [1, 1]} : vector<8x64xf32> to vector<8x8xf32>
    %116 = vector.extract_strided_slice %79 {offsets = [0, 48], sizes = [8, 8], strides = [1, 1]} : vector<8x64xf32> to vector<8x8xf32>
    "tpu.trace_start"() <{level = 10 : i32, message = "ne,ge->ng"}> : () -> ()
    %cst_48 = arith.constant dense<0.000000e+00> : vector<8x8xf32>
    %117 = tpu.matmul %114, %115, %cst_48 {dimension_numbers = #tpu.dot_dimension_numbers<[1], [1], [0], [0], [0, 0, 1, 0], [], []>} : vector<8x8xf32>, vector<8x8xf32>, vector<8x8xf32> -> vector<8x8xf32>
    "tpu.trace_stop"() : () -> ()
    %cst_49 = arith.constant dense<0xFF800000> : vector<8xf32>
    %118 = vector.multi_reduction <maximumf>, %117, %cst_49 [1] : vector<8x8xf32> to vector<8xf32>
    %119 = vector.shape_cast %118 : vector<8xf32> to vector<8x1xf32>
    %120 = vector.broadcast %119 : vector<8x1xf32> to vector<8x8xf32>
    %121 = arith.subf %117, %120 : vector<8x8xf32>
    %122 = math.exp %121 : vector<8x8xf32>
    %cst_50 = arith.constant dense<0.000000e+00> : vector<8xf32>
    %123 = vector.multi_reduction <add>, %122, %cst_50 [1] : vector<8x8xf32> to vector<8xf32>
    %124 = vector.shape_cast %123 : vector<8xf32> to vector<8x1xf32>
    %cst_51 = arith.constant 1.000000e+00 : f32
    %125 = vector.broadcast %cst_51 : f32 to vector<8x1xf32>
    %126 = arith.divf %125, %124 : vector<8x1xf32>
    %127 = vector.broadcast %126 : vector<8x1xf32> to vector<8x8xf32>
    %128 = arith.mulf %122, %127 : vector<8x8xf32>
    %cst_52 = arith.constant dense<0.000000e+00> : vector<8x8xf32>
    %129 = tpu.matmul %128, %116, %cst_52 {dimension_numbers = #tpu.dot_dimension_numbers<[1], [0], [0], [1], [0, 0, 1, 1], [], []>} : vector<8x8xf32>, vector<8x8xf32>, vector<8x8xf32> -> vector<8x8xf32>
    %c8_53 = arith.constant 8 : index
    %c16_54 = arith.constant 16 : index
    %130 = vector.load %arg6[%c8_53, %c16_54] : memref<16x32xf32, #tpu.memory_space<vmem>>, vector<8x8xf32>
    tpu.vector_store %arg6[%c8_53, %c16_54], %129 {strides = array<i32>} : memref<16x32xf32, #tpu.memory_space<vmem>>, vector<8x8xf32>,
    %131 = vector.extract_strided_slice %78 {offsets = [0, 24], sizes = [8, 8], strides = [1, 1]} : vector<8x32xf32> to vector<8x8xf32>
    %132 = vector.extract_strided_slice %79 {offsets = [0, 24], sizes = [8, 8], strides = [1, 1]} : vector<8x64xf32> to vector<8x8xf32>
    %133 = vector.extract_strided_slice %79 {offsets = [0, 56], sizes = [8, 8], strides = [1, 1]} : vector<8x64xf32> to vector<8x8xf32>
    "tpu.trace_start"() <{level = 10 : i32, message = "ne,ge->ng"}> : () -> ()
    %cst_55 = arith.constant dense<0.000000e+00> : vector<8x8xf32>
    %134 = tpu.matmul %131, %132, %cst_55 {dimension_numbers = #tpu.dot_dimension_numbers<[1], [1], [0], [0], [0, 0, 1, 0], [], []>} : vector<8x8xf32>, vector<8x8xf32>, vector<8x8xf32> -> vector<8x8xf32>
    "tpu.trace_stop"() : () -> ()
    %cst_56 = arith.constant dense<0xFF800000> : vector<8xf32>
    %135 = vector.multi_reduction <maximumf>, %134, %cst_56 [1] : vector<8x8xf32> to vector<8xf32>
    %136 = vector.shape_cast %135 : vector<8xf32> to vector<8x1xf32>
    %137 = vector.broadcast %136 : vector<8x1xf32> to vector<8x8xf32>
    %138 = arith.subf %134, %137 : vector<8x8xf32>
    %139 = math.exp %138 : vector<8x8xf32>
    %cst_57 = arith.constant dense<0.000000e+00> : vector<8xf32>
    %140 = vector.multi_reduction <add>, %139, %cst_57 [1] : vector<8x8xf32> to vector<8xf32>
    %141 = vector.shape_cast %140 : vector<8xf32> to vector<8x1xf32>
    %cst_58 = arith.constant 1.000000e+00 : f32
    %142 = vector.broadcast %cst_58 : f32 to vector<8x1xf32>
    %143 = arith.divf %142, %141 : vector<8x1xf32>
    %144 = vector.broadcast %143 : vector<8x1xf32> to vector<8x8xf32>
    %145 = arith.mulf %139, %144 : vector<8x8xf32>
    %cst_59 = arith.constant dense<0.000000e+00> : vector<8x8xf32>
    %146 = tpu.matmul %145, %133, %cst_59 {dimension_numbers = #tpu.dot_dimension_numbers<[1], [0], [0], [1], [0, 0, 1, 1], [], []>} : vector<8x8xf32>, vector<8x8xf32>, vector<8x8xf32> -> vector<8x8xf32>
    %c8_60 = arith.constant 8 : index
    %c24_61 = arith.constant 24 : index
    %147 = vector.load %arg6[%c8_60, %c24_61] : memref<16x32xf32, #tpu.memory_space<vmem>>, vector<8x8xf32>
    tpu.vector_store %arg6[%c8_60, %c24_61], %146 {strides = array<i32>} : memref<16x32xf32, #tpu.memory_space<vmem>>, vector<8x8xf32>,
    %c0_62 = arith.constant 0 : index
    %c0_63 = arith.constant 0 : index
    %148 = vector.load %arg6[%c0_62, %c0_63] : memref<16x32xf32, #tpu.memory_space<vmem>>, vector<16x32xf32>
    %c0_64 = arith.constant 0 : index
    %c0_65 = arith.constant 0 : index
    %149 = vector.load %arg4[%c0_64, %c0_65] : memref<32x32xf32, #tpu.memory_space<vmem>>, vector<32x32xf32>
    %cst_66 = arith.constant dense<0.000000e+00> : vector<16x32xf32>
    %150 = tpu.matmul %148, %149, %cst_66 {dimension_numbers = #tpu.dot_dimension_numbers<[1], [0], [0], [1], [0, 0, 1, 1], [], []>} : vector<16x32xf32>, vector<32x32xf32>, vector<16x32xf32> -> vector<16x32xf32>
    %c0_67 = arith.constant 0 : index
    %c0_68 = arith.constant 0 : index
    %151 = vector.load %arg5[%c0_67, %c0_68] : memref<16x32xf32, #tpu.memory_space<vmem>>, vector<16x32xf32>
    tpu.vector_store %arg5[%c0_67, %c0_68], %150 {strides = array<i32>} : memref<16x32xf32, #tpu.memory_space<vmem>>, vector<16x32xf32>,
    return
  }
}

</mosaic_0001>

<bundles_post_ra>
// kernel: tpu_custom_call.1
= control target key start
LH: loop header
LB: loop body
LE: loop exit
PB: predicated region body
PF: predicated region fallthrough
CT: control target
= control target key end

     0   :  { %10 = vsyncpa [#allocation4], 0  ;;  %s2439_s0 = inlined_call_operand.hbm [shape: f32[16,32], index: 0, kind: input, shape index: {}]   ;;  %s2440_s1 = inlined_call_operand.hbm [shape: f32[16,32], index: 1, kind: input, shape index: {}]   ;;  %s2441_s2 = inlined_call_operand.hbm [shape: f32[32,32], index: 2, kind: input, shape index: {}]   ;;  %s2442_s3 = inlined_call_operand.hbm [shape: f32[32,64], index: 3, kind: input, shape index: {}]   ;;  %s2443_s4 = inlined_call_operand.hbm [shape: f32[32,32], index: 4, kind: input, shape index: {}]   ;;  %s2444_s5 = inlined_call_operand.hbm [shape: f32[16,32], index: 5, kind: output, shape index: {}]  }
   0x1   :  { %11 = vsyncpa [#allocation7], 0 }
   0x2   :  { %12 = vsyncpa [#allocation10], 0 }
   0x3   :  { %13 = vsyncpa [#allocation5], 0  ;;  %s2142_s18 = smov [#allocation6]   ;;  %s2143_s20 = smov [#allocation9]  }
   0x4   :  { %s31_s19 = sshll.u32 %s2142_s18, 4  ;;  %s55_s21 = sshll.u32 %s2143_s20, 4  ;;  %s32_s19 = int_to_ptr.vmem [resolvable:$true] %s31_s19  ;;  %s2191_s21 = int_to_ptr.vmem [resolvable:$true] %s55_s21 }
   0x5   :  { %s2002_s24 = scalar_lea.hbm %s2440_s1, 256 }
   0x6   :  { %p2003_p0 = scmp.ne.s32.totalorder %s2440_s1, %s2002_s24  ;;  %p2006_p1 = scmp.lt.u32.totalorder %s2002_s24, %s2440_s1 }
   0x8   :  { %p2008_p2 = pnand %p2006_p1, %p2003_p0 }
   0xa   :  { %2011 = shalt.err (!%p2008_p2)
}
   0xb   :  { %s2012_s29 = scalar_lea.vmem %s32_s19, 256  ;;  %p2017_p4 = scmp.lt.s32.totalorder %s32_s19, %s32_s19 }
   0xc   :  { %p2013_p3 = scmp.ne.s32.totalorder %s32_s19, %s2012_s29  ;;  %p2018_p5 = scmp.lt.s32.totalorder %s2012_s29, %s2012_s29 }
   0xe   :  { %p2019_p6 = por %p2018_p5, %p2017_p4 }
  0x10   :  { %p2020_p7 = pnand %p2019_p6, %p2013_p3 }
  0x12   :  { %2023 = shalt.err (!%p2020_p7)
}
  0x13   :  { %s2144_s30 = smov 128   ;;  %s2145_s6 = smov 8  }
  0x14   :  { %37 = dma.hbm_to_vmem [thread:$0]  %s2440_s1, 256, %s32_s19, [#allocation7], %s2144_s30, %s2144_s30, %s2145_s6  }
  0x15   :  { %s2024_s11 = scalar_lea.hbm %s2442_s3, 512 }
  0x16   :  { %p2025_p8 = scmp.ne.s32.totalorder %s2442_s3, %s2024_s11  ;;  %p2028_p9 = scmp.lt.u32.totalorder %s2024_s11, %s2442_s3 }
  0x18   :  { %p2030_p10 = pnand %p2028_p9, %p2025_p8 }
  0x1a   :  { %2033 = shalt.err (!%p2030_p10)
}
  0x1b   :  { %s2034_s16 = scalar_lea.vmem %s2191_s21, 512  ;;  %p2039_p12 = scmp.lt.s32.totalorder %s2191_s21, %s2191_s21 }
  0x1c   :  { %p2035_p11 = scmp.ne.s32.totalorder %s2191_s21, %s2034_s16  ;;  %p2040_p13 = scmp.lt.s32.totalorder %s2034_s16, %s2034_s16 }
  0x1e   :  { %p2041_p0 = por %p2040_p13, %p2039_p12 }
  0x20   :  { %p2042_p1 = pnand %p2041_p0, %p2035_p11 }
  0x22   :  { %2045 = shalt.err (!%p2042_p1)
}
  0x23   :  { %61 = dma.hbm_to_vmem [thread:$0]  %s2442_s3, 512, %s2191_s21, [#allocation10], %s2144_s30, %s2144_s30, %s2145_s6  }
  0x24   :  { %s2146_s18 = smov [#allocation3]   ;;  %s2147_s20 = smov [#allocation8]  }
  0x25   :  { %s19_s19 = sshll.u32 %s2146_s18, 4  ;;  %s43_s22 = sshll.u32 %s2147_s20, 4  ;;  %s20_s19 = int_to_ptr.vmem [resolvable:$true] %s19_s19  ;;  %s2228_s22 = int_to_ptr.vmem [resolvable:$true] %s43_s22 }
  0x26   :  { %s2046_s25 = scalar_lea.hbm %s2439_s0, 256 }
  0x27   :  { %p2047_p2 = scmp.ne.s32.totalorder %s2439_s0, %s2046_s25  ;;  %p2050_p3 = scmp.lt.u32.totalorder %s2046_s25, %s2439_s0 }
  0x29   :  { %p2052_p4 = pnand %p2050_p3, %p2047_p2 }
  0x2b   :  { %2055 = shalt.err (!%p2052_p4)
}
  0x2c   :  { %s2056_s3 = scalar_lea.vmem %s20_s19, 256  ;;  %p2061_p6 = scmp.lt.s32.totalorder %s20_s19, %s20_s19 }
  0x2d   :  { %p2057_p5 = scmp.ne.s32.totalorder %s20_s19, %s2056_s3  ;;  %p2062_p7 = scmp.lt.s32.totalorder %s2056_s3, %s2056_s3 }
  0x2f   :  { %p2063_p8 = por %p2062_p7, %p2061_p6 }
  0x31   :  { %p2064_p9 = pnand %p2063_p8, %p2057_p5 }
  0x33   :  { %2067 = shalt.err (!%p2064_p9)
}
  0x34   :  { %25 = dma.hbm_to_vmem [thread:$0]  %s2439_s0, 256, %s20_s19, [#allocation4], %s2144_s30, %s2144_s30, %s2145_s6  }
  0x35   :  { %s2068_s10 = scalar_lea.hbm %s2441_s2, 512 }
  0x36   :  { %p2069_p10 = scmp.ne.s32.totalorder %s2441_s2, %s2068_s10  ;;  %p2072_p11 = scmp.lt.u32.totalorder %s2068_s10, %s2441_s2 }
  0x38   :  { %p2074_p12 = pnand %p2072_p11, %p2069_p10 }
  0x3a   :  { %2077 = shalt.err (!%p2074_p12)
}
  0x3b   :  { %s2078_s15 = scalar_lea.vmem %s2228_s22, 512  ;;  %p2083_p0 = scmp.lt.s32.totalorder %s2228_s22, %s2228_s22 }
  0x3c   :  { %p2079_p13 = scmp.ne.s32.totalorder %s2228_s22, %s2078_s15  ;;  %p2084_p1 = scmp.lt.s32.totalorder %s2078_s15, %s2078_s15 }
  0x3e   :  { %p2085_p2 = por %p2084_p1, %p2083_p0 }
  0x40   :  { %p2086_p3 = pnand %p2085_p2, %p2079_p13 }
  0x42   :  { %2089 = shalt.err (!%p2086_p3)
}
  0x43   :  { %49 = dma.hbm_to_vmem [thread:$0]  %s2441_s2, 512, %s2228_s22, [#allocation7], %s2144_s30, %s2144_s30, %s2145_s6  }
  0x44   :  { %s2148_s1 = smov [#allocation11]   ;;  %s2090_s20 = scalar_lea.hbm %s2443_s4, 512 }
  0x45   :  { %s67_s17 = sshll.u32 %s2148_s1, 4  ;;  %p2091_p4 = scmp.ne.s32.totalorder %s2443_s4, %s2090_s20  ;;  %s68_s17 = int_to_ptr.vmem [resolvable:$true] %s67_s17 }
  0x46   :  { %p2094_p5 = scmp.lt.u32.totalorder %s2090_s20, %s2443_s4 }
  0x48   :  { %p2096_p6 = pnand %p2094_p5, %p2091_p4 }
  0x4a   :  { %2099 = shalt.err (!%p2096_p6)
}
  0x4b   :  { %s2100_s27 = scalar_lea.vmem %s68_s17, 512  ;;  %p2105_p8 = scmp.lt.s32.totalorder %s68_s17, %s68_s17 }
  0x4c   :  { %p2101_p7 = scmp.ne.s32.totalorder %s68_s17, %s2100_s27  ;;  %p2106_p9 = scmp.lt.s32.totalorder %s2100_s27, %s2100_s27 }
  0x4e   :  { %p2107_p10 = por %p2106_p9, %p2105_p8 }
  0x50   :  { %p2108_p11 = pnand %p2107_p10, %p2101_p7 }
  0x52   :  { %2111 = shalt.err (!%p2108_p11)
}
  0x53   :  { %73 = dma.hbm_to_vmem [thread:$0]  %s2443_s4, 512, %s68_s17, [#allocation10], %s2144_s30, %s2144_s30, %s2145_s6  }
  0x54   :  { %2134 = dma.done.wait [#allocation4], 256  }
  0x55   :  { %2135 = vsyncadd [#allocation4], 4294967040 }
  0x56   :  { %2136 = dma.done.wait [#allocation7], 768  }
  0x57   :  { %2137 = vsyncadd [#allocation7], 4294966528 }
  0x58   :  { %2138 = dma.done.wait [#allocation10], 1024  }
  0x59   :  { %2139 = vsyncadd [#allocation10], 4294966272  ;;  %v181_v0 = vld [vmem:[#allocation9] sm:$0xff]  ;;  %v182_v1 = vld [vmem:[#allocation9 + $0x8] sm:$0xff]  ;;  %vm95_vm0 = vcmask 261120   ;;  %v2149_v16 = vmov 0.0  }
  0x5a   :  { %v91_v2 = vld [vmem:[#allocation8] sm:$0xff]  ;;  %v1935_v3 = vpack.c.bf16 %v182_v1, %v181_v0  ;;  %v92_v4 = vld [vmem:[#allocation8 + $0x8] sm:$0xff]  ;;  %v183_v5 = vld [vmem:[#allocation9 + $0x10] sm:$0xff]  ;;  %vm2150_vm1 = vmmov 0   ;;  %vm266_vm2 = vcmask 64512   ;;  %s2151_s4 = smov 112  }
  0x5b   :  { %v184_v6 = vld [vmem:[#allocation9 + $0x18] sm:$0xff]  ;;  %v1927_v7 = vpack.c.bf16 %v92_v4, %v91_v2  ;;  %v93_v9 = vld [vmem:[#allocation8 + $0x10] sm:$0xff]  ;;  %v89_v13 = vld [vmem:[#allocation3] sm:$0xff]  ;;  %s2152_s28 = smov 120   ;;  %s2153_s29 = smov 104   ;;  %vm602_vm3 = vcmask 130112  }
  0x5c   :  { %v1939_v8 = vpack.c.bf16 %v184_v6, %v183_v5  ;;  %v94_v10 = vld [vmem:[#allocation8 + $0x18] sm:$0xff]  ;;  %v179_v11 = vld [vmem:[#allocation6] sm:$0xff]  ;;  %1936 = vmatprep.subr.bf16.mxu1 %v1935_v3  ;;  %1822 = vmatprep.mubr.msk.f32.mxu0 %vm95_vm0, %v89_v13  ;;  %v90_v15 = vld [vmem:[#allocation3 + $0x8] sm:$0xff]  ;;  %s2154_s3 = smov 88   ;;  %s2155_s21 = smov 96   ;;  %vm774_vm4 = vcmask 195712  }
  0x5d   :  { %v1931_v12 = vpack.c.bf16 %v94_v10, %v93_v9  ;;  %1833 = vmatprep.mubr.msk.f32.mxu1 %vm95_vm0, %v179_v11  ;;  %1928 = vmatprep.subr.bf16.mxu0 %v1927_v7  ;;  %v180_v14 = vld [vmem:[#allocation6 + $0x8] sm:$0xff]  ;;  %s2156_s7 = smov 72   ;;  %s2157_s8 = smov 80   ;;  %vm946_vm5 = vcmask 261312  }
  0x5e   :  { %1938 = vmatpush3.bf16.msra.mxu1 %v1935_v3  ;;  %1930 = vmatpush3.bf16.msra.mxu0 %v1927_v7  ;;  %s2158_s9 = smov 16   ;;  %s2159_s10 = smov 24  }
  0x5f   :  { %1940 = vmatprep.subr.bf16.mxu1 %v1939_v8  ;;  %1932 = vmatprep.subr.bf16.mxu0 %v1931_v12  ;;  %s2160_s11 = smov [#allocation12]  }
  0x60   :  { %s1720_s12 = sshll.u32 %s2160_s11, 4  ;;  %s1721_s12 = int_to_ptr.vmem [resolvable:$true] %s1720_s12 }
  0x61   :  { %s2112_s13 = scalar_lea.vmem %s1721_s12, 256  ;;  %p2117_p13 = scmp.lt.s32.totalorder %s1721_s12, %s1721_s12 }
  0x62   :  { %1942 = vmatpush3.bf16.msra.mxu1 %v1939_v8  ;;  %1934 = vmatpush3.bf16.msra.mxu0 %v1931_v12  ;;  %p2113_p12 = scmp.ne.s32.totalorder %s1721_s12, %s2112_s13  ;;  %p2118_p0 = scmp.lt.s32.totalorder %s2112_s13, %s2112_s13 }
  0x63   :  { %1836 = vmatprep.subr.mxu1 %v2149_v16  ;;  %1846 = vmatprep.subr.mxu0 %v2149_v16 }
  0x64   :  { %p2119_p1 = por %p2118_p0, %p2117_p13 }
  0x65   :  { %1834 = vmatmul.mubr.msk.f32.vlgmr.msra.gmra.mrb[0].mxu1 %vm95_vm0, %v180_v14  ;;  %1823 = vmatmul.mubr.msk.f32.vlgmr.msra.gmra.mrb[0].mxu0 %vm95_vm0, %v90_v15 }
  0x66   :  { %1838 = vmatprep.mubr.msk.f32.mxu1 %vm2150_vm1, %v2149_v16  ;;  %1848 = vmatprep.mubr.msk.f32.mxu0 %vm2150_vm1, %v2149_v16  ;;  %p2120_p2 = pnand %p2119_p1, %p2113_p12 }
 0x138   :  { %v2290_v17 = vpop.f32.mrb[0].mxu1  ;;  %v1824_v18 = vpop.f32.mrb[0].mxu0 }
 0x139   :  { %v2292_v19 = vpop.f32.mrb[1].mxu1  ;;  %v168_v20 = vpop.f32.mrb[1].mxu0  ;;  %v178_v22 = vmul.f32 0.35355338, %v1824_v18 }
 0x13a   :  { %606 = vrot.lane.b32.xlu1 %v2292_v19, %s2151_s4  ;;  %434 = vrot.lane.b32.xlu0 %v2292_v19, %s2152_s28  ;;  %v177_v21 = vmul.f32 0.35355338, %v168_v20 }
 0x13b   :  { %1837 = vmatpush3.xpose.msk.msra.mxu1 %vm266_vm2, %v2292_v19 }
 0x13c   :  { %1841 = vmatprep.subr.mxu1 %v2149_v16 }
 0x13e   :  { %1839 = vmatmul.mubr.msk.f32.vlgmr.msra.gmra.mrb[2].mxu1 %vm266_vm2, %v177_v21  ;;  %604 = vrot.lane.b32.xlu1 %v177_v21, %s2151_s4 }
 0x13f   :  { %432 = vrot.lane.b32.xlu0 %v177_v21, %s2152_s28  ;;  %1843 = vmatprep.mubr.msk.f32.mxu1 %vm2150_vm1, %v2149_v16 }
 0x142   :  { %776 = vrot.lane.b32.xlu1 %v177_v21, %s2153_s29 }
 0x143   :  { %778 = vrot.lane.b32.xlu0 %v2292_v19, %s2153_s29 }
 0x146   :  { %1113 = vrot.lane.b32.xlu1 %v178_v22, %s2152_s28 }
 0x147   :  { %1115 = vrot.lane.b32.xlu0 %v2290_v17, %s2152_s28 }
 0x14a   :  { %1284 = vrot.lane.b32.xlu1 %v178_v22, %s2151_s4 }
 0x14b   :  { %1286 = vrot.lane.b32.xlu0 %v2290_v17, %s2151_s4 }
 0x14e   :  { %1455 = vrot.lane.b32.xlu1 %v178_v22, %s2153_s29 }
 0x14f   :  { %1457 = vrot.lane.b32.xlu0 %v2290_v17, %s2153_s29 }
 0x152   :  { %522 = vrot.lane.b32.xlu1 %v2292_v19, %s2154_s3 }
 0x153   :  { %355 = vrot.lane.b32.xlu0 %v2292_v19, %s2155_s21 }
 0x1ac   :  { %v607_v23 = vpop.permute.xlu1 %606  ;;  %v435_v24 = vpop.permute.xlu0 %434 }
 0x1ad   :  { %1847 = vmatpush3.xpose.msk.msra.mxu0 %vm266_vm2, %v435_v24 }
 0x1ae   :  { %1856 = vmatprep.subr.mxu0 %v2149_v16 }
 0x1b0   :  { %v605_v25 = vpop.permute.xlu1 %604 }
 0x1b1   :  { %v433_v26 = vpop.permute.xlu0 %432 }
 0x1b2   :  { %1849 = vmatmul.mubr.msk.f32.vlgmr.msra.gmra.mrb[2].mxu0 %vm266_vm2, %v433_v26 }
 0x1b3   :  { %1857 = vmatpush3.xpose.msk.msra.mxu0 %vm266_vm2, %v607_v23  ;;  %1858 = vmatprep.mubr.msk.f32.mxu0 %vm2150_vm1, %v2149_v16 }
 0x1b4   :  { %1866 = vmatprep.subr.mxu0 %v2149_v16  ;;  %v777_v28 = vpop.permute.xlu1 %776 }
 0x1b5   :  { %v779_v27 = vpop.permute.xlu0 %778 }
 0x1b6   :  { %1859 = vmatmul.mubr.msk.f32.vlgmr.msra.gmra.mrb[4].mxu0 %vm266_vm2, %v605_v25 }
 0x1b7   :  { %1867 = vmatpush3.xpose.msk.msra.mxu0 %vm266_vm2, %v779_v27  ;;  %1868 = vmatprep.mubr.msk.f32.mxu0 %vm2150_vm1, %v2149_v16 }
 0x1b8   :  { %1876 = vmatprep.subr.mxu0 %v2149_v16  ;;  %v1114_v30 = vpop.permute.xlu1 %1113 }
 0x1b9   :  { %v1116_v29 = vpop.permute.xlu0 %1115 }
 0x1ba   :  { %1869 = vmatmul.mubr.msk.f32.vlgmr.msra.gmra.mrb[6].mxu0 %vm266_vm2, %v777_v28 }
 0x1bb   :  { %1877 = vmatpush3.xpose.msk.msra.mxu0 %vm266_vm2, %v2290_v17  ;;  %1878 = vmatprep.mubr.msk.f32.mxu0 %vm2150_vm1, %v2149_v16 }
 0x1bc   :  { %1886 = vmatprep.subr.mxu0 %v2149_v16  ;;  %v1285_v33 = vpop.permute.xlu1 %1284 }
 0x1bd   :  { %v1287_v31 = vpop.permute.xlu0 %1286 }
 0x1be   :  { %1879 = vmatmul.mubr.msk.f32.vlgmr.msra.gmra.mrb[8].mxu0 %vm266_vm2, %v178_v22 }
 0x1bf   :  { %1887 = vmatpush3.xpose.msk.msra.mxu0 %vm266_vm2, %v1116_v29  ;;  %1888 = vmatprep.mubr.msk.f32.mxu0 %vm2150_vm1, %v2149_v16 }
 0x1c0   :  { %1896 = vmatprep.subr.mxu0 %v2149_v16  ;;  %v1456_v35 = vpop.permute.xlu1 %1455 }
 0x1c1   :  { %v1458_v32 = vpop.permute.xlu0 %1457 }
 0x1c2   :  { %1889 = vmatmul.mubr.msk.f32.vlgmr.msra.gmra.mrb[10].mxu0 %vm266_vm2, %v1114_v30 }
 0x1c3   :  { %1897 = vmatpush3.xpose.msk.msra.mxu0 %vm266_vm2, %v1287_v31  ;;  %1898 = vmatprep.mubr.msk.f32.mxu0 %vm2150_vm1, %v2149_v16 }
 0x1c4   :  { %1906 = vmatprep.subr.mxu0 %v2149_v16  ;;  %v523_v1 = vpop.permute.xlu1 %522 }
 0x1c5   :  { %v356_v34 = vpop.permute.xlu0 %355 }
 0x1c6   :  { %1842 = vmatpush3.msra.mxu1 %v356_v34  ;;  %1899 = vmatmul.mubr.msk.f32.vlgmr.msra.gmra.mrb[12].mxu0 %vm266_vm2, %v1285_v33 }
 0x1c7   :  { %1907 = vmatpush3.xpose.msk.msra.mxu0 %vm266_vm2, %v1458_v32  ;;  %1908 = vmatprep.mubr.msk.f32.mxu0 %vm2150_vm1, %v2149_v16 }
 0x1c8   :  { %1851 = vmatprep.subr.mxu1 %v2149_v16 }
 0x1ca   :  { %1909 = vmatmul.mubr.msk.f32.vlgmr.msra.gmra.mrb[14].mxu0 %vm266_vm2, %v1456_v35 }
 0x211   :  { %v339_v36 = vpop.f32.mrb[2].mxu1 }
 0x212   :  { %v1840_v37 = vpop.f32.mrb[3].mxu1  ;;  %v343_v38 = vsel %vm266_vm2, %v339_v36, -inf }
 0x213   :  { %344 = vmax.xlane.f32.xlu0 %v343_v38 }
 0x285   :  { %v506_v39 = vpop.f32.mrb[2].mxu0 }
 0x286   :  { %v1850_v40 = vpop.f32.mrb[3].mxu0  ;;  %v510_v41 = vsel %vm266_vm2, %v506_v39, -inf }
 0x287   :  { %511 = vmax.xlane.f32.xlu1 %v510_v41 }
 0x289   :  { %v678_v42 = vpop.f32.mrb[4].mxu0 }
 0x28a   :  { %v1860_v43 = vpop.f32.mrb[5].mxu0  ;;  %v682_v44 = vsel %vm266_vm2, %v678_v42, -inf }
 0x28b   :  { %683 = vmax.xlane.f32.xlu0 %v682_v44 }
 0x28d   :  { %v850_v45 = vpop.f32.mrb[6].mxu0 }
 0x28e   :  { %v1870_v46 = vpop.f32.mrb[7].mxu0  ;;  %v854_v47 = vsel %vm266_vm2, %v850_v45, -inf }
 0x28f   :  { %855 = vmax.xlane.f32.xlu0 %v854_v47 }
 0x291   :  { %v1020_v48 = vpop.f32.mrb[8].mxu0 }
 0x292   :  { %v1880_v49 = vpop.f32.mrb[9].mxu0  ;;  %v1024_v50 = vsel %vm266_vm2, %v1020_v48, -inf }
 0x293   :  { %1025 = vmax.xlane.f32.xlu1 %v1024_v50 }
 0x295   :  { %v1187_v51 = vpop.f32.mrb[10].mxu0 }
 0x296   :  { %v1890_v52 = vpop.f32.mrb[11].mxu0  ;;  %v1191_v53 = vsel %vm266_vm2, %v1187_v51, -inf }
 0x297   :  { %1192 = vmax.xlane.f32.xlu0 %v1191_v53 }
 0x299   :  { %v1358_v54 = vpop.f32.mrb[12].mxu0 }
 0x29a   :  { %v1900_v55 = vpop.f32.mrb[13].mxu0  ;;  %v1362_v56 = vsel %vm266_vm2, %v1358_v54, -inf }
 0x29b   :  { %1363 = vmax.xlane.f32.xlu1 %v1362_v56 }
 0x29d   :  { %v1529_v57 = vpop.f32.mrb[14].mxu0 }
 0x29e   :  { %v1910_v58 = vpop.f32.mrb[15].mxu0  ;;  %v1533_v59 = vsel %vm266_vm2, %v1529_v57, -inf }
 0x29f   :  { %1534 = vmax.xlane.f32.xlu0 %v1533_v59 }
 0x2a0   :  { %v345_v60 = vpop.xlane.xlu0 %344 }
 0x2a1   :  { %v346_v61 = vsub.f32 %v339_v36, %v345_v60 }
 0x2a3   :  { %v347_v62 = vmul.f32 1.442695, %v346_v61 }
 0x2a5   :  { %1970 = vpow2.f32 %v347_v62 }
 0x2ac   :  { %866 = vrot.lane.b32.xlu1 %v2292_v19, %s2156_s7 }
 0x2af   :  { %v1971_v63 = vpop.eup %1970 }
 0x2b0   :  { %v349_v0 = vsel %vm266_vm2, %v1971_v63, 0.0 }
 0x2b5   :  { %694 = vrot.lane.b32.xlu0 %v2292_v19, %s2157_s8 }
 0x2d0   :  { %350 = vadd.xlane.f32.xlu1 %v349_v0 }
 0x314   :  { %v512_v2 = vpop.xlane.xlu1 %511 }
 0x315   :  { %v513_v3 = vsub.f32 %v506_v39, %v512_v2 }
 0x317   :  { %v514_v4 = vmul.f32 1.442695, %v513_v3 }
 0x318   :  { %v684_v5 = vpop.xlane.xlu0 %683 }
 0x319   :  { %1972 = vpow2.f32 %v514_v4  ;;  %v685_v6 = vsub.f32 %v678_v42, %v684_v5 }
 0x31b   :  { %v686_v7 = vmul.f32 1.442695, %v685_v6 }
 0x31c   :  { %v856_v8 = vpop.xlane.xlu0 %855 }
 0x31d   :  { %1974 = vpow2.f32 %v686_v7  ;;  %v857_v9 = vsub.f32 %v850_v45, %v856_v8 }
 0x31f   :  { %v858_v10 = vmul.f32 1.442695, %v857_v9 }
 0x320   :  { %v1026_v19 = vpop.xlane.xlu1 %1025 }
 0x321   :  { %1976 = vpow2.f32 %v858_v10  ;;  %v1027_v20 = vsub.f32 %v1020_v48, %v1026_v19  ;;  %v1631_v19 = vld [vmem:[#allocation11 + $0x18] sm:$0xff] }
 0x323   :  { %v1973_v11 = vpop.eup %1972  ;;  %v1028_v24 = vmul.f32 1.442695, %v1027_v20 }
 0x324   :  { %v516_v12 = vsel %vm266_vm2, %v1973_v11, 0.0  ;;  %v1193_v21 = vpop.xlane.xlu0 %1192 }
 0x325   :  { %517 = vadd.xlane.f32.xlu0 %v516_v12  ;;  %v1194_v23 = vsub.f32 %v1187_v51, %v1193_v21  ;;  %1978 = vpow2.f32 %v1028_v24  ;;  %v1629_v12 = vld [vmem:[#allocation11 + $0x8] sm:$0xff] }
 0x327   :  { %v1975_v13 = vpop.eup %1974  ;;  %v1195_v27 = vmul.f32 1.442695, %v1194_v23 }
 0x328   :  { %v688_v14 = vsel %vm266_vm2, %v1975_v13, 0.0  ;;  %v1364_v22 = vpop.xlane.xlu1 %1363 }
 0x329   :  { %689 = vadd.xlane.f32.xlu1 %v688_v14  ;;  %v1365_v25 = vsub.f32 %v1358_v54, %v1364_v22  ;;  %1980 = vpow2.f32 %v1195_v27 }
 0x32b   :  { %v2359_v15 = vpop.eup %1976  ;;  %v1366_v28 = vmul.f32 1.442695, %v1365_v25 }
 0x32c   :  { %v860_v18 = vsel %vm266_vm2, %v2359_v15, 0.0  ;;  %v1535_v26 = vpop.xlane.xlu0 %1534  ;;  %v867_v31 = vpop.permute.xlu1 %866 }
 0x32d   :  { %861 = vadd.xlane.f32.xlu0 %v860_v18  ;;  %v1536_v29 = vsub.f32 %v1529_v57, %v1535_v26  ;;  %1982 = vpow2.f32 %v1366_v28  ;;  %v1630_v18 = vld [vmem:[#allocation11 + $0x10] sm:$0xff] }
 0x32e   :  { %v1947_v20 = vpack.c.bf16 %v1631_v19, %v1630_v18 }
 0x32f   :  { %v1537_v30 = vmul.f32 1.442695, %v1536_v29  ;;  %v1979_v32 = vpop.eup %1978 }
 0x330   :  { %v1030_v35 = vsel %vm266_vm2, %v1979_v32, 0.0  ;;  %v695_v43 = vpop.permute.xlu0 %694 }
 0x331   :  { %1984 = vpow2.f32 %v1537_v30 }
 0x333   :  { %v2367_v33 = vpop.eup %1980 }
 0x334   :  { %v1197_v38 = vsel %vm266_vm2, %v2367_v33, 0.0 }
 0x337   :  { %v2370_v36 = vpop.eup %1982 }
 0x338   :  { %v1368_v37 = vsel %vm266_vm2, %v2370_v36, 0.0 }
 0x33a   :  { %1203 = vrot.lane.b32.xlu1 %v2290_v17, %s2154_s3 }
 0x33b   :  { %v2376_v39 = vpop.eup %1984 }
 0x33c   :  { %v1539_v40 = vsel %vm266_vm2, %v2376_v39, 0.0 }
 0x343   :  { %1036 = vrot.lane.b32.xlu0 %v2290_v17, %s2155_s21 }
 0x35d   :  { %v351_v34 = vpop.xlane.xlu1 %350 }
 0x35e   :  { %1986 = vrcp.f32 %v351_v34  ;;  %1031 = vadd.xlane.f32.xlu1 %v1030_v35 }
 0x362   :  { %1369 = vadd.xlane.f32.xlu1 %v1368_v37  ;;  %1198 = vadd.xlane.f32.xlu0 %v1197_v38 }
 0x366   :  { %1540 = vadd.xlane.f32.xlu1 %v1539_v40 }
 0x368   :  { %v1987_v41 = vpop.eup %1986 }
 0x369   :  { %v354_v42 = vmul.f32 %v1987_v41, %v1971_v63 }
 0x36b   :  { %1844 = vmatmul.mubr.msk.f32.vlgmr.msra.gmra.mrb[4].mxu1 %vm266_vm2, %v354_v42 }
 0x36c   :  { %1852 = vmatpush3.msra.mxu1 %v523_v1  ;;  %1853 = vmatprep.mubr.msk.f32.mxu1 %vm2150_vm1, %v2149_v16 }
 0x36d   :  { %1861 = vmatprep.subr.mxu1 %v2149_v16 }
 0x377   :  { %1545 = vrot.lane.b32.xlu1 %v2290_v17, %s2156_s7 }
 0x378   :  { %1374 = vrot.lane.b32.xlu0 %v2290_v17, %s2157_s8 }
 0x3b2   :  { %v518_v44 = vpop.xlane.xlu0 %517 }
 0x3b3   :  { %1988 = vrcp.f32 %v518_v44 }
 0x3b6   :  { %v690_v45 = vpop.xlane.xlu1 %689 }
 0x3b7   :  { %1990 = vrcp.f32 %v690_v45 }
 0x3ba   :  { %v862_v46 = vpop.xlane.xlu0 %861  ;;  %v1204_v53 = vpop.permute.xlu1 %1203 }
 0x3bb   :  { %1992 = vrcp.f32 %v862_v46 }
 0x3bd   :  { %v1989_v47 = vpop.eup %1988 }
 0x3be   :  { %v521_v48 = vmul.f32 %v1989_v47, %v1973_v11  ;;  %v1037_v52 = vpop.permute.xlu0 %1036  ;;  %v1628_v11 = vld [vmem:[#allocation11] sm:$0xff] }
 0x3bf   :  { %v1943_v14 = vpack.c.bf16 %v1629_v12, %v1628_v11 }
 0x3c0   :  { %1854 = vmatmul.mubr.msk.f32.vlgmr.msra.gmra.mrb[6].mxu1 %vm266_vm2, %v521_v48 }
 0x3c1   :  { %v1991_v49 = vpop.eup %1990  ;;  %1862 = vmatpush3.msra.mxu1 %v695_v43  ;;  %1863 = vmatprep.mubr.msk.f32.mxu1 %vm2150_vm1, %v2149_v16 }
 0x3c2   :  { %v693_v50 = vmul.f32 %v1991_v49, %v1975_v13  ;;  %1871 = vmatprep.subr.mxu1 %v2149_v16  ;;  %1944 = vmatprep.subr.bf16.mxu0 %v1943_v14 }
 0x3c3   :  { %1946 = vmatpush3.bf16.msra.mxu0 %v1943_v14 }
 0x3c4   :  { %1864 = vmatmul.mubr.msk.f32.vlgmr.msra.gmra.mrb[8].mxu1 %vm266_vm2, %v693_v50  ;;  %1948 = vmatprep.subr.bf16.mxu0 %v1947_v20 }
 0x3c5   :  { %v1993_v17 = vpop.eup %1992  ;;  %1872 = vmatpush3.msra.mxu1 %v867_v31  ;;  %1873 = vmatprep.mubr.msk.f32.mxu1 %vm2150_vm1, %v2149_v16 }
 0x3c6   :  { %v865_v51 = vmul.f32 %v1993_v17, %v2359_v15  ;;  %1881 = vmatprep.subr.mxu1 %v2149_v16 }
 0x3c7   :  { %1950 = vmatpush3.bf16.msra.mxu0 %v1947_v20 }
 0x3c8   :  { %1874 = vmatmul.mubr.msk.f32.vlgmr.msra.gmra.mrb[10].mxu1 %vm266_vm2, %v865_v51 }
 0x3c9   :  { %1882 = vmatpush3.msra.mxu1 %v1037_v52  ;;  %1883 = vmatprep.mubr.msk.f32.mxu1 %vm2150_vm1, %v2149_v16 }
 0x3ca   :  { %1891 = vmatprep.subr.mxu1 %v2149_v16 }
 0x3eb   :  { %v1032_v54 = vpop.xlane.xlu1 %1031 }
 0x3ec   :  { %1994 = vrcp.f32 %v1032_v54 }
 0x3ef   :  { %v1370_v55 = vpop.xlane.xlu1 %1369  ;;  %v1199_v56 = vpop.xlane.xlu0 %1198 }
 0x3f0   :  { %1996 = vrcp.f32 %v1199_v56 }
 0x3f1   :  { %1998 = vrcp.f32 %v1370_v55 }
 0x3f3   :  { %v1541_v57 = vpop.xlane.xlu1 %1540  ;;  %v1375_v63 = vpop.permute.xlu0 %1374 }
 0x3f4   :  { %2000 = vrcp.f32 %v1541_v57 }
 0x3f6   :  { %v1995_v58 = vpop.eup %1994 }
 0x3f7   :  { %v1035_v59 = vmul.f32 %v1995_v58, %v1979_v32  ;;  %v1546_v2 = vpop.permute.xlu1 %1545 }
 0x3f9   :  { %1884 = vmatmul.mubr.msk.f32.vlgmr.msra.gmra.mrb[12].mxu1 %vm266_vm2, %v1035_v59 }
 0x3fa   :  { %1892 = vmatpush3.msra.mxu1 %v1204_v53  ;;  %1893 = vmatprep.mubr.msk.f32.mxu1 %vm2150_vm1, %v2149_v16  ;;  %v1997_v60 = vpop.eup %1996 }
 0x3fb   :  { %1901 = vmatprep.subr.mxu1 %v2149_v16  ;;  %v1202_v61 = vmul.f32 %v1997_v60, %v2367_v33  ;;  %v1999_v62 = vpop.eup %1998 }
 0x3fc   :  { %v1373_v0 = vmul.f32 %v1999_v62, %v2370_v36 }
 0x3fd   :  { %1894 = vmatmul.mubr.msk.f32.vlgmr.msra.gmra.mrb[14].mxu1 %vm266_vm2, %v1202_v61 }
 0x3fe   :  { %1902 = vmatpush3.msra.mxu1 %v1375_v63  ;;  %1903 = vmatprep.mubr.msk.f32.mxu1 %vm2150_vm1, %v2149_v16  ;;  %v2001_v1 = vpop.eup %2000 }
 0x3ff   :  { %1911 = vmatprep.subr.mxu1 %v2149_v16  ;;  %v1544_v3 = vmul.f32 %v2001_v1, %v2376_v39 }
 0x401   :  { %1904 = vmatmul.mubr.msk.f32.vlgmr.msra.gmra.mrb[16].mxu1 %vm266_vm2, %v1373_v0 }
 0x402   :  { %1912 = vmatpush3.msra.mxu1 %v1546_v2  ;;  %1913 = vmatprep.mubr.msk.f32.mxu1 %vm2150_vm1, %v2149_v16 }
 0x405   :  { %1914 = vmatmul.mubr.msk.f32.vlgmr.msra.gmra.mrb[18].mxu1 %vm266_vm2, %v1544_v3 }
 0x43e   :  { %v427_v4 = vpop.f32.mrb[4].mxu1 }
 0x43f   :  { %431 = vst.msk [vmem:[#allocation2] sm:$0xff] %vm266_vm2, %v427_v4  ;;  %v1845_v5 = vpop.f32.mrb[5].mxu1 }
 0x493   :  { %v594_v6 = vpop.f32.mrb[6].mxu1 }
 0x494   :  { %599 = vrot.lane.b32.xlu0 %v594_v6, %s2145_s6  ;;  %v1855_v7 = vpop.f32.mrb[7].mxu1 }
 0x497   :  { %v766_v8 = vpop.f32.mrb[8].mxu1 }
 0x498   :  { %771 = vrot.lane.b32.xlu1 %v766_v8, %s2158_s9  ;;  %v1865_v9 = vpop.f32.mrb[9].mxu1 }
 0x49b   :  { %v938_v10 = vpop.f32.mrb[10].mxu1 }
 0x49c   :  { %943 = vrot.lane.b32.xlu1 %v938_v10, %s2159_s10  ;;  %v1875_v16 = vpop.f32.mrb[11].mxu1 }
 0x4cc   :  { %v1108_v13 = vpop.f32.mrb[12].mxu1 }
 0x4cd   :  { %1112 = vst.msk [vmem:[#allocation2 + $0x8] sm:$0xff] %vm266_vm2, %v1108_v13  ;;  %v1885_v15 = vpop.f32.mrb[13].mxu1 }
 0x4d0   :  { %v1275_v21 = vpop.f32.mrb[14].mxu1 }
 0x4d1   :  { %1280 = vrot.lane.b32.xlu0 %v1275_v21, %s2145_s6  ;;  %v1895_v22 = vpop.f32.mrb[15].mxu1 }
 0x4d4   :  { %v1446_v23 = vpop.f32.mrb[16].mxu1 }
 0x4d5   :  { %1451 = vrot.lane.b32.xlu0 %v1446_v23, %s2158_s9  ;;  %v1905_v24 = vpop.f32.mrb[17].mxu1 }
 0x4d8   :  { %v1617_v25 = vpop.f32.mrb[18].mxu1 }
 0x4d9   :  { %1622 = vrot.lane.b32.xlu1 %v1617_v25, %s2159_s10  ;;  %v1915_v26 = vpop.f32.mrb[19].mxu1 }
 0x506   :  { %v600_v27 = vpop.permute.xlu0 %599 }
 0x507   :  { %603 = vst.msk [vmem:[#allocation2] sm:$0xff] %vm602_vm3, %v600_v27 }
 0x50a   :  { %v772_v28 = vpop.permute.xlu1 %771 }
 0x50b   :  { %775 = vst.msk [vmem:[#allocation2] sm:$0xff] %vm774_vm4, %v772_v28 }
 0x50e   :  { %v944_v29 = vpop.permute.xlu1 %943 }
 0x50f   :  { %947 = vst.msk [vmem:[#allocation2] sm:$0xff] %vm946_vm5, %v944_v29 }
 0x516   :  { %v1626_v30 = vld [vmem:[#allocation2] sm:$0xff] }
 0x517   :  { %1924 = vmatprep.mubr.msk.f32.mxu0 %vm95_vm0, %v1626_v30 }
 0x543   :  { %v1281_v31 = vpop.permute.xlu0 %1280 }
 0x544   :  { %1283 = vst.msk [vmem:[#allocation2 + $0x8] sm:$0xff] %vm602_vm3, %v1281_v31 }
 0x547   :  { %v1452_v32 = vpop.permute.xlu0 %1451 }
 0x548   :  { %1454 = vst.msk [vmem:[#allocation2 + $0x8] sm:$0xff] %vm774_vm4, %v1452_v32 }
 0x54b   :  { %v1623_v33 = vpop.permute.xlu1 %1622 }
 0x54c   :  { %1625 = vst.msk [vmem:[#allocation2 + $0x8] sm:$0xff] %vm946_vm5, %v1623_v33 }
 0x553   :  { %v1627_v34 = vld [vmem:[#allocation2 + $0x8] sm:$0xff] }
 0x554   :  { %1925 = vmatmul.mubr.msk.f32.vlgmr.msra.gmra.mrb[16].mxu0 %vm95_vm0, %v1627_v34 }
 0x627   :  { %v1926_v35 = vpop.f32.mrb[16].mxu0 }
 0x628   :  { %1714 = vst.msk [vmem:[#allocation12 + $0x8] sm:$0xff] %vm95_vm0, %v1926_v35  ;;  %v1704_v36 = vpop.f32.mrb[17].mxu0 }
 0x629   :  { %1713 = vst.msk [vmem:[#allocation12] sm:$0xff] %vm95_vm0, %v1704_v36 }
 0x62a   :  { %2123 = shalt.err (!%p2120_p2)
}
 0x62b   :  { %s2124_s0 = scalar_lea.hbm %s2444_s5, 256 }
 0x62c   :  { %p2125_p3 = scmp.ne.s32.totalorder %s2444_s5, %s2124_s0  ;;  %p2128_p4 = scmp.lt.u32.totalorder %s2124_s0, %s2444_s5 }
 0x62e   :  { %p2130_p5 = pnand %p2128_p4, %p2125_p3 }
 0x630   :  { %2133 = shalt.err (!%p2130_p5)
}
 0x631   :  { %1726 = dma.vmem_to_hbm [thread:$0]  %s1721_s12, 256, %s2444_s5, [#allocation5], %s2144_s30, %s2144_s30, %s2145_s6  }
 0x632   :  { %2140 = dma.done.wait [#allocation5], 256  }
 0x633   :  { %2141 = vsyncadd [#allocation5], 4294967040 }
 0x634   :  { %1730 = vsyncpa [#allocation4], 1 }
 0x635   :  { %1731 = vsyncpa [#allocation7], 1 }
 0x636   :  { %1732 = vsyncpa [#allocation10], 1 }
 0x637   :  { %1733 = vsyncpa [#allocation5], 1 }

</bundles_post_ra>
